<compile_context>
chip_gen: v5e
topology: v5e:2x2
jax: 0.10.0
libtpu: 0.0.40
codegen_flags: <defaults>
</compile_context>

<pallas_src>
import jax
import jax.numpy as jnp
from jax.experimental import pallas as pl
from jax.experimental.pallas import tpu as pltpu


def _vmem_capacity_bytes() -> int:
    """Physical per-core VMEM, with a conservative (v7x, 64 MiB) fallback."""
    try:
        info = pltpu.get_tpu_info()
        cap = getattr(info, "vmem_capacity_bytes", None)
        if cap:
            return int(cap)
    except Exception:
        pass
    return 64 << 20


def _largest_div_multiple(n: int, base: int, limit: int):
    """Largest divisor of n that is a multiple of `base` and <= limit (None if none)."""
    if n % base != 0:
        return None
    m = n // base
    best = None
    for d in range(1, m + 1):
        if m % d == 0:
            cand = d * base
            if cand <= limit and (best is None or cand > best):
                best = cand
    return best


def _batch_granularity(B: int, itemsize: int) -> int:
    """Smallest dense sublane granularity for the batch (second-to-last) dim.

    Native packed tile height is 8 * (4 // itemsize): 8 rows for f32, 16 for
    bf16, 32 for int8/fp8.  Falls back to 8 (legal but vreg-padded for
    sub-32-bit dtypes), then to the full extent B.
    """
    g = 8 * max(1, 4 // itemsize)
    while g > 8 and (B < g or B % g != 0):
        g //= 2
    if B >= g and B % g == 0:
        return g
    return B


def _choose_tiles(B: int, F: int, itemsize: int, target: int):
    """Pick a (Bb, T) block of a (B, F) array.  F must be a multiple of 128."""
    g = _batch_granularity(B, itemsize)

    # Lane (feature) tile: multiple of 128 dividing F, sized so g rows fit budget.
    lane_limit = max(128, target // max(g * itemsize, 1))
    T = _largest_div_multiple(F, 128, lane_limit) or 128

    # Batch tile: divisor of B that is a multiple of g, block <= target.
    if B * T * itemsize <= target:
        Bb = B
    elif g < B:
        row_limit = max(g, target // max(T * itemsize, 1))
        Bb = _largest_div_multiple(B, g, row_limit) or g
    else:
        Bb = B  # can't legally sub-tile; accept the larger block

    # v7x shards the "parallel" grid axes across 2 TensorCores: guarantee at
    # least 2 grid steps whenever a legal split exists.
    if (F // T) * (B // Bb) == 1:
        if T % 256 == 0:
            T //= 2
        elif Bb % (2 * g) == 0:
            Bb //= 2
    return Bb, T


def _add_pe_kernel(x_ref, pe_ref, o_ref):
    # x_ref: (Bb, T), pe_ref: (1, T) -> broadcast add over the batch block.
    o_ref[...] = x_ref[...] + pe_ref[...]


def learnable_positional_encoding_1d(x: jnp.ndarray, pe: jnp.ndarray) -> jnp.ndarray:
    """x: (B, S, E), pe: (1, S, E) -> x + pe (broadcast over batch)."""
    B, S, E = x.shape
    assert pe.shape == (1, S, E), (pe.shape, (1, S, E))
    pe = pe.astype(x.dtype)
    itemsize = jnp.dtype(x.dtype).itemsize

    # Flatten seq & embed into one lane-dense feature axis (free for the default
    # contiguous layout; a transposed x costs one extra HBM pass before the kernel).
    F = S * E
    x2 = x.reshape(B, F)
    pe2 = pe.reshape(1, F)

    # Pad the feature axis up to a multiple of 128: keeps stores unmasked `vst`
    # and the axis tileable (no oversized full-extent fallback block).
    Fp = ((F + 127) // 128) * 128
    padded = Fp != F
    if padded:
        x2 = jnp.pad(x2, ((0, 0), (0, Fp - F)))
        pe2 = jnp.pad(pe2, ((0, 0), (0, Fp - F)))

    # Generation-aware block / VMEM sizing.
    cap = _vmem_capacity_bytes()           # 64 MiB on v7x, 128 MiB on v5e/v6e
    target = max(4 << 20, cap // 8)        # ~8 MiB blocks on v7x, ~16 MiB on v5e/v6e
    Bb, T = _choose_tiles(B, Fp, itemsize, target)
    n_f = Fp // T
    n_b = B // Bb

    # VMEM need: x + out blocks double-buffered; the (1, T) pe block pads its
    # sublanes to the native packed tile (~32 bytes per lane per buffer).
    block_bytes = Bb * T * itemsize
    pe_block_bytes = 32 * T
    need = 4 * block_bytes + 2 * pe_block_bytes
    vmem_limit = max(32 << 20, need + max(need // 4, 4 << 20))
    vmem_limit = min(vmem_limit, cap)
    vmem_limit = int(max(vmem_limit, need + (2 << 20)))  # never under-provision

    bytes_accessed = (2 * B * Fp + Fp) * itemsize

    out2 = pl.pallas_call(
        _add_pe_kernel,
        out_shape=jax.ShapeDtypeStruct((B, Fp), x.dtype),
        grid_spec=pltpu.PrefetchScalarGridSpec(
            num_scalar_prefetch=0,
            # Feature blocks outer, batch blocks inner: the pe block index is
            # invariant across consecutive (inner) steps -> fetched ~once per
            # feature block, not once per grid step.
            grid=(n_f, n_b),
            in_specs=[
                pl.BlockSpec((Bb, T), lambda j, i: (i, j)),   # x block
                pl.BlockSpec((1, T), lambda j, i: (0, j)),    # pe block (batch-invariant)
            ],
            out_specs=pl.BlockSpec((Bb, T), lambda j, i: (i, j)),
        ),
        # Write the result back into x's HBM buffer; a real footprint win only
        # when the caller donates x (otherwise XLA inserts a defensive copy).
        input_output_aliases={0: 0},
        cost_estimate=pl.CostEstimate(
            flops=B * Fp, transcendentals=0, bytes_accessed=bytes_accessed),
        compiler_params=pltpu.CompilerParams(
            dimension_semantics=("parallel", "parallel"),
            vmem_limit_bytes=vmem_limit,
        ),
    )(x2, pe2)

    if padded:
        out2 = out2[:, :F]
    return out2.reshape(B, S, E)


class LearnablePositionalEncoding1D:
    """JAX/Pallas port of the torch module (learnable pe parameter, randn init)."""

    def __init__(self, sequence_length: int, embed_dim: int, key=None, dtype=jnp.float32):
        if key is None:
            key = jax.random.PRNGKey(0)
        self.sequence_length = sequence_length
        self.embed_dim = embed_dim
        # nn.Parameter(torch.randn(1, sequence_length, embed_dim)) equivalent.
        self.positional_encoding = jax.random.normal(
            key, (1, sequence_length, embed_dim), dtype=dtype
        )

    def __call__(self, x: jnp.ndarray) -> jnp.ndarray:
        return learnable_positional_encoding_1d(x, self.positional_encoding)


if __name__ == "__main__":
    # Small shapes consistent with the module: batch=2, seq=8, embed=32.
    B, S, E = 2, 8, 32
    key = jax.random.PRNGKey(0)
    kx, kp = jax.random.split(key)

    x = jax.random.normal(kx, (B, S, E), dtype=jnp.float32)
    module = LearnablePositionalEncoding1D(sequence_length=S, embed_dim=E, key=kp)

    # Reference computed BEFORE the kernel call (kernel output may alias x's buffer).
    ref = x + module.positional_encoding

    out = module(x)
    out = jax.block_until_ready(out)

    assert out.shape == (B, S, E)
    assert jnp.allclose(out, ref, atol=1e-6, rtol=1e-6)

    print("KERNEL_OK")
</pallas_src>

<mosaic_0001>
module attributes {stable_mosaic.version = 11 : i64} {
  func.func @_add_pe_kernel(%arg0: i32, %arg1: i32, %arg2: memref<2x128xf32, #tpu.memory_space<vmem>>, %arg3: memref<1x128xf32, #tpu.memory_space<vmem>>, %arg4: memref<2x128xf32, #tpu.memory_space<vmem>>) attributes {dimension_semantics = [#tpu.dimension_semantics<parallel>, #tpu.dimension_semantics<parallel>], iteration_bounds = array<i64: 2, 1>, scalar_prefetch = 0 : i64, scratch_operands = 0 : i64, tpu.core_type = #tpu.core_type<tc>, window_params = [{transform_indices = @transform_0, window_bounds = array<i64: 2, 128>}, {transform_indices = @transform_1, window_bounds = array<i64: 1, 128>}, {transform_indices = @transform_2, window_bounds = array<i64: 2, 128>}]} {
    %c0 = arith.constant 0 : index
    %c0_0 = arith.constant 0 : index
    %0 = vector.load %arg2[%c0, %c0_0] : memref<2x128xf32, #tpu.memory_space<vmem>>, vector<2x128xf32>
    %c0_1 = arith.constant 0 : index
    %c0_2 = arith.constant 0 : index
    %1 = vector.load %arg3[%c0_1, %c0_2] : memref<1x128xf32, #tpu.memory_space<vmem>>, vector<1x128xf32>
    %2 = vector.broadcast %1 : vector<1x128xf32> to vector<2x128xf32>
    %3 = arith.addf %0, %2 : vector<2x128xf32>
    %c0_3 = arith.constant 0 : index
    %c0_4 = arith.constant 0 : index
    %4 = vector.load %arg4[%c0_3, %c0_4] : memref<2x128xf32, #tpu.memory_space<vmem>>, vector<2x128xf32>
    tpu.vector_store %arg4[%c0_3, %c0_4], %3 {strides = array<i32>} : memref<2x128xf32, #tpu.memory_space<vmem>>, vector<2x128xf32>,
    return
  }
  func.func @transform_0(%arg0: i32, %arg1: i32) -> (i32, i32) {
    %c0_i32 = arith.constant 0 : i32
    return %arg1, %arg0 : i32, i32
  }
  func.func @transform_1(%arg0: i32, %arg1: i32) -> (i32, i32) {
    %c0_i32 = arith.constant 0 : i32
    %c0_i32_0 = arith.constant 0 : i32
    return %c0_i32, %arg0 : i32, i32
  }
  func.func @transform_2(%arg0: i32, %arg1: i32) -> (i32, i32) {
    %c0_i32 = arith.constant 0 : i32
    return %arg1, %arg0 : i32, i32
  }
}

</mosaic_0001>

<bundles_post_ra>
// kernel: tpu_custom_call.1
= control target key start
LH: loop header
LB: loop body
LE: loop exit
PB: predicated region body
PF: predicated region fallthrough
CT: control target
= control target key end

     0   :  { %7 = vsyncpa [#allocation3], 0  ;;  %s639_s0 = inlined_call_operand.hbm [shape: f32[2,256], index: 0, kind: input, shape index: {}, may-alias: {0,2}]   ;;  %s640_s1 = inlined_call_operand.vmem [shape: f32[1,256], index: 1, kind: input, shape index: {}]   ;;  %s641_s2 = inlined_call_operand.hbm [shape: f32[2,256], index: 2, kind: output, shape index: {}, may-alias: {0,2}]  }
   0x1   :  { %9 = vsyncpa [#allocation3 + $0x1], 0 }
   0x2   :  { %10 = vsyncpa [#allocation4], 0 }
   0x3   :  { %12 = vsyncpa [#allocation4 + $0x1], 0  ;;  %s514_s9 = smov 0   ;;  %s516_s10 = smov 0  }
   0x4   :  { %s518_s11 = smov 0   ;;  %s520_s12 = smov 0  }
   0x5   :  { %s522_s13 = smov 0   ;;  %s524_s14 = smov 0  }
   0x6 LB: > { %s309_s15 = sadd.s32 4294967295, %s497_s14   ;;  %s310_s16 = sadd.s32 4294967294, %s497_s14   ;;  %s497_s14 = sphi %s524_s14, %s18_s14   ;;  %s493_s13 = sphi %s522_s13, %s650_s13   ;;  %s489_s12 = sphi %s520_s12, %s649_s12   ;;  %s485_s11 = sphi %s518_s11, %s648_s11   ;;  %s481_s10 = sphi %s516_s10, %s647_s10   ;;  %s477_s9 = sphi %s514_s9, %s646_s9  }
   0x7   : > { %s30_s17 = sadd.s32 1, %s493_s13  ;;  %s39_s18 = sadd.s32 1, %s485_s11 }
   0x8   : > { %p32_p0 = scmp.ge.s32.totalorder %s30_s17, 2  ;;  %p46_p1 = scmp.ne.s32.totalorder %s485_s11, %s481_s10 }
   0x9   : > { %p47_p2 = scmp.eq.s32.totalorder %s497_s14, 0  ;;  %p52_p3 = scmp.ne.s32.totalorder %s481_s10, %s477_s9 }
   0xa   : > { %s652_s17 = smov (%p32_p0, %s30_s17), 0  ;;  %p53_p5 = scmp.eq.s32.totalorder %s309_s15, 0 }
   0xb   : > { %p555_p4 = por %p47_p2, %p46_p1  ;;  %s35_s20 = ssub.s32 %s493_s13, %s652_s17 }
   0xc   : > { %p104_p6 = scmp.eq.s32.totalorder %s309_s15, 1  ;;  %p37_p7 = scmp.eq.s32.totalorder %s35_s20, 0 }
   0xd   : > { %p561_p8 = por %p53_p5, %p52_p3  ;;  %p110_p10 = scmp.eq.s32.totalorder %s310_s16, 1 }
   0xe   : > { %p565_p9 = por %p104_p6, %p46_p1  ;;  %p312_p12 = scmp.ge.s32.totalorder %s497_s14, 2 }
   0xf   : > { %s570_s23 = scalar_select %p37_p7, %s485_s11, %s39_s18  }
  0x10   : > { %p572_p11 = por %p110_p10, %p52_p3  ;;  %p334_p13 = scmp.lt.s32.totalorder %s497_s14, 2 }
  0x11   : > { %s130_s25 = sand.u32 1, %s485_s11   ;;  %s314_s27 = sshll.u32 %s493_s13, 1 }
  0x12   : > { %s313_s26 = sshll.u32 %s130_s25, 1  ;;  %s140_s30 = scalar_lea.hbm %s639_s0, %s314_s27 }
  0x13   : > { %s134_s3 = scalar_lea.vmem [#allocation2], %s313_s26  ;;  %s142_s5 = sshll.u32 %s140_s30, 4  ;;  %s143_s5 = int_to_ptr.hbm [resolvable:$true] %s142_s5 }
  0x14   : > { %s144_s4 = sshll.u32 %s134_s3, 4  ;;  %p327_p0 = pnand %p334_p13, %p555_p4  ;;  %s145_s4 = int_to_ptr.vmem [resolvable:$true] %s144_s4 }
  0x15   : > { %p315_p1 = scmp.ge.s32.totalorder %s497_s14, 1  ;;  %p155_p2 = scmp.lt.s32.totalorder %s497_s14, 3 }
  0x16   : > { %s131_s6 = scalar_lea.sflag [#allocation3], %s130_s25 }
  0x17   : > { %329 = dma.hbm_to_vmem [thread:$0]  (!%p327_p0), %s143_s5, 32, %s145_s4, %s131_s6  }
  0x18   : > { %p156_p3 = pnand %p315_p1, %p155_p2 }
  0x19   : > { %s588_s7 = sand.u32 (!%p156_p3), 1, %s481_s10  }
  0x1a   : > { %159 = sbr.rel (%p156_p3) target bundleno = 49 (0x31), region = 28  ;;  %s316_s8 = sshll.u32 (!%p156_p3), %s588_s7, 1 }
  0x1b   : > { %s162_s15 = scalar_lea.sflag (!%p156_p3), [#allocation3], %s588_s7  ;;  %s165_s16 = scalar_lea.vmem (!%p156_p3), [#allocation2], %s316_s8 }
  0x1f   : > { %468 = dma.done.wait (%p561_p8), %s162_s15, 32  }
  0x20   : > { %470 = vsyncadd (%p561_p8), %s162_s15, 4294967264  ;;  %p190_p4 = scmp.lt.s32.totalorder %s489_s12, 1  ;;  %s319_s19 = sshll.u32 %s489_s12, 1  ;;  %v193_v0 = vld [vmem:[%s165_s16] sm:$0x3] }
  0x21   : > { %s213_s29 = scalar_lea.hbm %s641_s2, %s319_s19  ;;  %s189_s30 = scalar_lea.vmem [#allocation5], %s316_s8 }
  0x22   : > { %s191_s18 = scalar_select %p190_p4, %s489_s12, 1 }
  0x23   : > { %s215_s3 = sshll.u32 %s189_s30, 4  ;;  %s217_s21 = sshll.u32 %s213_s29, 4  ;;  %s216_s3 = int_to_ptr.vmem [resolvable:$true] %s215_s3  ;;  %s218_s21 = int_to_ptr.hbm [resolvable:$true] %s217_s21 }
  0x24   : > { %s192_s26 = scalar_lea.vmem %s640_s1, %s191_s18  ;;  %s201_s4 = scalar_lea.sflag [#allocation4], %s588_s7 }
  0x25   : > { %v384_v1 = vld [vmem:[%s192_s26] ss:$0 sm:$0xff]  ;;  %s429_s12 = sshra.s32 %s218_s21, 4  ;;  %s435_s8 = scalar_lea.hbm %s641_s2, 4  ;;  %s430_s12 = int_to_ptr.hbm [resolvable:$true] %s429_s12 }
  0x26   : > { %v198_v2 = vadd.f32 %v384_v1, %v193_v0  ;;  %s431_s5 = scalar_lea.hbm %s430_s12, 2  ;;  %p436_p8 = scmp.lt.s32.totalorder %s430_s12, %s641_s2 }
  0x27   : > { %p432_p5 = scmp.ne.s32.totalorder %s430_s12, %s431_s5  ;;  %p437_p10 = scmp.lt.s32.totalorder %s435_s8, %s431_s5 }
  0x28   : > { %199 = vst [vmem:[%s189_s30] sm:$0x3] %v198_v2 }
  0x29   : > { %p433_p6 = pnand %p432_p5, %p565_p9  ;;  %p438_p13 = por %p437_p10, %p436_p8 }
  0x2b   : > { %p434_p7 = pneg %p433_p6 }
  0x2d   : > { %p439_p0 = pnand %p438_p13, %p434_p7 }
  0x2f   : > { %442 = shalt.err (!%p439_p0)
}
  0x30   : > { %324 = dma.vmem_to_hbm [thread:$0]  (%p565_p9), %s216_s3, 32, %s218_s21, %s201_s4  }
  0x31 PF: > { %s229_s7 = sand.u32 1, %s477_s9   ;;  %p331_p1 = pnand %p312_p12, %p572_p11 }
  0x32   : > { %s230_s16 = scalar_lea.sflag [#allocation4], %s229_s7 }
  0x33   : > { %p332_p2 = pneg %p331_p1 }
  0x35   : > { %472 = dma.done.wait (%p332_p2), %s230_s16, 32  }
  0x36   : > { %474 = vsyncadd (%p332_p2), %s230_s16, 4294967264  ;;  %s18_s14 = sadd.s32 1, %s497_s14   ;;  %s646_s9 = smov %s481_s10 }
  0x37   : > { %p15_p3 = scmp.ge.s32.totalorder %s18_s14, 4   ;;  %s647_s10 = smov %s485_s11 }
  0x38   : > { %s648_s11 = smov %s570_s23  ;;  %s649_s12 = smov %s493_s13 }
  0x39   : > { %s650_s13 = smov %s652_s17  ;;  %17 = sbr.rel (!%p15_p3) target bundleno = 6 (0x6), region = 76 }
  0x3e   :  { %236 = vsyncpa [#allocation3], 1 }
  0x3f   :  { %238 = vsyncpa [#allocation3 + $0x1], 1 }
  0x40   :  { %239 = vsyncpa [#allocation4], 1 }
  0x41   :  { %241 = vsyncpa [#allocation4 + $0x1], 1 }

</bundles_post_ra>
